<compile_context>
chip_gen: v7x
topology: tpu7x:2x2x1
jax: 0.10.0
libtpu: 0.0.40
codegen_flags: <defaults>
</compile_context>

<pallas_src>
import jax
import jax.numpy as jnp
import numpy as np
from jax import lax
from jax.experimental import pallas as pl
from jax.experimental.pallas import tpu as pltpu


def _round_up(x, m):
    return (x + m - 1) // m * m


def _make_kernel(*, K, dilation, padding, pad8, Lp, S, B_tile, C_out_p,
                 has_down):
    """Builds the TemporalBlock kernel for one static configuration."""
    M1 = B_tile * S - pad8                       # rows of (valid + gap) output
    off = [pad8 - padding + j * dilation for j in range(K)]

    def kernel(*refs):
        if has_down:
            (x_ref, w1_ref, b1_ref, w2_ref, b2_ref, wd_ref, bd_ref,
             o_ref, hp_ref, acc_ref) = refs
        else:
            (x_ref, w1_ref, b1_ref, w2_ref, b2_ref,
             o_ref, hp_ref, acc_ref) = refs

        # ---- conv1: K dilated taps as lane-dense MXU matmuls (bf16 in, f32 acc)
        acc_ref[...] = jnp.dot(x_ref[off[0]:off[0] + M1, :], w1_ref[0],
                               preferred_element_type=jnp.float32)
        for j in range(1, K):
            acc_ref[...] += jnp.dot(x_ref[off[j]:off[j] + M1, :], w1_ref[j],
                                    preferred_element_type=jnp.float32)
        h = jnp.maximum(acc_ref[...] + b1_ref[...], 0.0)   # ReLU (+dropout=id)

        # ---- causal re-pad of hidden activations into VMEM scratch
        # (replaces the old jnp.concatenate; all slice starts are multiples
        #  of 8, so every write is sublane-aligned)
        for b in range(B_tile):
            if pad8 > 0:
                hp_ref[b * S:b * S + pad8, :] = jnp.zeros(
                    (pad8, C_out_p), jnp.bfloat16)
            hp_ref[b * S + pad8:(b + 1) * S, :] = (
                h[b * S:b * S + Lp, :].astype(jnp.bfloat16))

        # ---- conv2 ----
        acc_ref[...] = jnp.dot(hp_ref[off[0]:off[0] + M1, :], w2_ref[0],
                               preferred_element_type=jnp.float32)
        for j in range(1, K):
            acc_ref[...] += jnp.dot(hp_ref[off[j]:off[j] + M1, :], w2_ref[j],
                                    preferred_element_type=jnp.float32)
        out2 = jnp.maximum(acc_ref[...] + b2_ref[...], 0.0)

        # ---- residual branch (aligned slice: pad8 % 8 == 0) ----
        x_res = x_ref[pad8:pad8 + M1, :]
        if has_down:
            res = jnp.dot(x_res, wd_ref[...],
                          preferred_element_type=jnp.float32) + bd_ref[...]
        else:
            res = x_res.astype(jnp.float32)

        final = jnp.maximum(out2 + res, 0.0)

        # ---- store only the valid Lp rows of each batch element (aligned) ----
        for b in range(B_tile):
            o_ref[b * Lp:(b + 1) * Lp, :] = (
                final[b * S:b * S + Lp, :].astype(o_ref.dtype))

    return kernel


def temporal_block_forward(x, params, *, kernel_size, dilation, padding):
    """x: (N, C_in, L) float32 (PyTorch NCL).  Returns (N, C_out, L) float32."""
    w1, b1, w2, b2, wd, bd = params
    N, C_in, L = x.shape
    K = kernel_size
    C_out = w1.shape[2]
    d = dilation

    # Residual add needs length preservation (standard TCN configuration).
    assert padding == d * (K - 1), (
        "TemporalBlock requires padding == dilation*(kernel_size-1)")

    has_down = wd is not None
    if not has_down:
        assert C_in == C_out, "no downsample => n_inputs must equal n_outputs"

    # Lane-dense channel padding and sublane-aligned time padding.
    C_in_p = _round_up(max(C_in, 1), 128)
    C_out_p = _round_up(max(C_out, 1), 128)
    Lp = _round_up(L, 8)
    pad8 = _round_up(padding, 8)
    S = pad8 + Lp                       # rows per (padded) batch element

    # Batch tile: raise matmul M / amortize per-step overhead, but keep at
    # least two grid steps when possible so both v7x TensorCores get work.
    B_tile = max(1, 512 // S)
    if N >= 2:
        B_tile = min(B_tile, N // 2)
    B_tile = max(1, min(B_tile, N))
    N_pad = _round_up(N, B_tile)

    # (N, C, L) -> (N, L, C); one fused pad handles batch / causal-left time /
    # channel padding, then batch is flattened into the time axis.
    x_tc = jnp.transpose(x, (0, 2, 1))
    x_p = jnp.pad(x_tc, ((0, N_pad - N), (pad8, Lp - L), (0, C_in_p - C_in)))
    x_in = x_p.reshape(N_pad * S, C_in_p).astype(jnp.bfloat16)

    w1_p = jnp.pad(w1, ((0, 0), (0, C_in_p - C_in),
                        (0, C_out_p - C_out))).astype(jnp.bfloat16)
    w2_p = jnp.pad(w2, ((0, 0), (0, C_out_p - C_out),
                        (0, C_out_p - C_out))).astype(jnp.bfloat16)
    b1_p = jnp.pad(b1, (0, C_out_p - C_out)).reshape(1, C_out_p).astype(jnp.float32)
    b2_p = jnp.pad(b2, (0, C_out_p - C_out)).reshape(1, C_out_p).astype(jnp.float32)

    in_specs = [
        pl.BlockSpec((B_tile * S, C_in_p), lambda n: (n, 0)),
        pl.BlockSpec((K, C_in_p, C_out_p), lambda n: (0, 0, 0)),
        pl.BlockSpec((1, C_out_p), lambda n: (0, 0)),
        pl.BlockSpec((K, C_out_p, C_out_p), lambda n: (0, 0, 0)),
        pl.BlockSpec((1, C_out_p), lambda n: (0, 0)),
    ]
    args = [x_in, w1_p, b1_p, w2_p, b2_p]
    if has_down:
        wd_p = jnp.pad(wd, ((0, C_in_p - C_in),
                            (0, C_out_p - C_out))).astype(jnp.bfloat16)
        bd_p = jnp.pad(bd, (0, C_out_p - C_out)).reshape(1, C_out_p).astype(jnp.float32)
        in_specs += [pl.BlockSpec((C_in_p, C_out_p), lambda n: (0, 0)),
                     pl.BlockSpec((1, C_out_p), lambda n: (0, 0))]
        args += [wd_p, bd_p]

    kernel = _make_kernel(K=K, dilation=d, padding=padding, pad8=pad8, Lp=Lp,
                          S=S, B_tile=B_tile, C_out_p=C_out_p,
                          has_down=has_down)

    M1 = B_tile * S - pad8
    out_flat = pl.pallas_call(
        kernel,
        out_shape=jax.ShapeDtypeStruct((N_pad * Lp, C_out_p), jnp.float32),
        grid_spec=pltpu.PrefetchScalarGridSpec(
            num_scalar_prefetch=0,
            grid=(N_pad // B_tile,),
            in_specs=in_specs,
            out_specs=pl.BlockSpec((B_tile * Lp, C_out_p), lambda n: (n, 0)),
            scratch_shapes=[
                pltpu.VMEM((B_tile * S, C_out_p), jnp.bfloat16),  # padded hidden
                pltpu.VMEM((M1, C_out_p), jnp.float32),           # f32 accumulator
            ],
        ),
        compiler_params=pltpu.CompilerParams(
            dimension_semantics=("parallel",)),
    )(*args)

    out = out_flat.reshape(N_pad, Lp, C_out_p)[:N, :L, :C_out]
    return jnp.transpose(out, (0, 2, 1))   # back to (N, C_out, L)


# ---------------- pure-JAX reference (PyTorch semantics, f32) ----------------
def _conv1d_nc(x, w_oik, b, padding, dilation):
    y = lax.conv_general_dilated(
        x, w_oik, window_strides=(1,), padding=[(padding, padding)],
        rhs_dilation=(dilation,), dimension_numbers=('NCH', 'OIH', 'NCH'))
    return y + b[None, :, None]


def temporal_block_ref(x, params, *, kernel_size, dilation, padding):
    w1, b1, w2, b2, wd, bd = params
    w1_oik = jnp.transpose(w1, (2, 1, 0))
    w2_oik = jnp.transpose(w2, (2, 1, 0))
    h = _conv1d_nc(x, w1_oik, b1, padding, dilation)
    h = h[:, :, :h.shape[2] - padding]                 # Chomp1d
    h = jnp.maximum(h, 0.0)
    o = _conv1d_nc(h, w2_oik, b2, padding, dilation)
    o = o[:, :, :o.shape[2] - padding]                 # Chomp1d
    o = jnp.maximum(o, 0.0)
    if wd is None:
        res = x
    else:
        wd_oik = jnp.transpose(wd, (1, 0))[:, :, None]
        res = _conv1d_nc(x, wd_oik, bd, 0, 1)
    return jnp.maximum(o + res, 0.0)


def _run_case(key, *, N, C_in, C_out, L, K, d):
    padding = (K - 1) * d
    ks = jax.random.split(key, 7)
    w1 = 0.01 * jax.random.normal(ks[0], (K, C_in, C_out), jnp.float32)
    w2 = 0.01 * jax.random.normal(ks[1], (K, C_out, C_out), jnp.float32)
    b1 = 0.05 * jax.random.uniform(ks[2], (C_out,), jnp.float32, -1.0, 1.0)
    b2 = 0.05 * jax.random.uniform(ks[3], (C_out,), jnp.float32, -1.0, 1.0)
    if C_in != C_out:
        wd = 0.01 * jax.random.normal(ks[4], (C_in, C_out), jnp.float32)
        bd = 0.05 * jax.random.uniform(ks[5], (C_out,), jnp.float32, -1.0, 1.0)
    else:
        wd, bd = None, None
    params = (w1, b1, w2, b2, wd, bd)
    x = jax.random.normal(ks[6], (N, C_in, L), jnp.float32)

    out = temporal_block_forward(x, params, kernel_size=K, dilation=d,
                                 padding=padding)
    out = jax.block_until_ready(out)
    ref = temporal_block_ref(x, params, kernel_size=K, dilation=d,
                             padding=padding)
    ref = jax.block_until_ready(ref)

    assert out.shape == (N, C_out, L), out.shape
    # bf16 MXU operands vs f32 reference -> modest tolerance.
    np.testing.assert_allclose(np.asarray(out), np.asarray(ref),
                               rtol=5e-2, atol=5e-3)


if __name__ == "__main__":
    root = jax.random.PRNGKey(0)
    # 1) module-spec-like config (downsample present, dilation=2)
    _run_case(jax.random.fold_in(root, 0), N=2, C_in=4, C_out=8, L=16, K=3, d=2)
    # 2) batched time-flattening path (B_tile=2, batch padding, odd tap offset)
    _run_case(jax.random.fold_in(root, 1), N=5, C_in=3, C_out=8, L=12, K=2, d=1)
    # 3) identity-residual path (n_inputs == n_outputs, no downsample conv)
    _run_case(jax.random.fold_in(root, 2), N=2, C_in=4, C_out=4, L=16, K=3, d=1)
    print("KERNEL_OK")
</pallas_src>

<mosaic_0001>
module attributes {stable_mosaic.version = 11 : i64} {
  func.func @kernel(%arg0: i32, %arg1: memref<24x128xbf16, #tpu.memory_space<vmem>>, %arg2: memref<3x128x128xbf16, #tpu.memory_space<vmem>>, %arg3: memref<1x128xf32, #tpu.memory_space<vmem>>, %arg4: memref<3x128x128xbf16, #tpu.memory_space<vmem>>, %arg5: memref<1x128xf32, #tpu.memory_space<vmem>>, %arg6: memref<128x128xbf16, #tpu.memory_space<vmem>>, %arg7: memref<1x128xf32, #tpu.memory_space<vmem>>, %arg8: memref<16x128xf32, #tpu.memory_space<vmem>>, %arg9: memref<24x128xbf16, #tpu.memory_space<vmem>>, %arg10: memref<16x128xf32, #tpu.memory_space<vmem>>) attributes {dimension_semantics = [#tpu.dimension_semantics<parallel>], iteration_bounds = array<i64: 2>, scalar_prefetch = 0 : i64, scratch_operands = 2 : i64, tpu.core_type = #tpu.core_type<tc>, window_params = [{transform_indices = @transform_0, window_bounds = array<i64: 24, 128>}, {pipeline_mode = #tpu.pipeline_mode<synchronous>, transform_indices = @transform_1, window_bounds = array<i64: 3, 128, 128>}, {pipeline_mode = #tpu.pipeline_mode<synchronous>, transform_indices = @transform_2, window_bounds = array<i64: 1, 128>}, {pipeline_mode = #tpu.pipeline_mode<synchronous>, transform_indices = @transform_3, window_bounds = array<i64: 3, 128, 128>}, {pipeline_mode = #tpu.pipeline_mode<synchronous>, transform_indices = @transform_4, window_bounds = array<i64: 1, 128>}, {pipeline_mode = #tpu.pipeline_mode<synchronous>, transform_indices = @transform_5, window_bounds = array<i64: 128, 128>}, {pipeline_mode = #tpu.pipeline_mode<synchronous>, transform_indices = @transform_6, window_bounds = array<i64: 1, 128>}, {transform_indices = @transform_7, window_bounds = array<i64: 16, 128>}]} {
    %c4 = arith.constant 4 : index
    %c0 = arith.constant 0 : index
    %0 = vector.load %arg1[%c4, %c0] : memref<24x128xbf16, #tpu.memory_space<vmem>>, vector<16x128xbf16>
    %c0_0 = arith.constant 0 : index
    %c0_1 = arith.constant 0 : index
    %c0_2 = arith.constant 0 : index
    %1 = vector.load %arg2[%c0_0, %c0_1, %c0_2] : memref<3x128x128xbf16, #tpu.memory_space<vmem>>, vector<1x128x128xbf16>
    %2 = vector.shape_cast %1 : vector<1x128x128xbf16> to vector<128x128xbf16>
    %cst = arith.constant dense<0.000000e+00> : vector<16x128xf32>
    %3 = tpu.matmul %0, %2, %cst {dimension_numbers = #tpu.dot_dimension_numbers<[1], [0], [0], [1], [0, 0, 1, 1], [], []>} : vector<16x128xbf16>, vector<128x128xbf16>, vector<16x128xf32> -> vector<16x128xf32>
    %c0_3 = arith.constant 0 : index
    %c0_4 = arith.constant 0 : index
    %4 = vector.load %arg10[%c0_3, %c0_4] : memref<16x128xf32, #tpu.memory_space<vmem>>, vector<16x128xf32>
    tpu.vector_store %arg10[%c0_3, %c0_4], %3 {strides = array<i32>} : memref<16x128xf32, #tpu.memory_space<vmem>>, vector<16x128xf32>,
    %c0_5 = arith.constant 0 : index
    %c0_6 = arith.constant 0 : index
    %5 = vector.load %arg10[%c0_5, %c0_6] : memref<16x128xf32, #tpu.memory_space<vmem>>, vector<16x128xf32>
    %c6 = arith.constant 6 : index
    %c0_7 = arith.constant 0 : index
    %6 = vector.load %arg1[%c6, %c0_7] : memref<24x128xbf16, #tpu.memory_space<vmem>>, vector<16x128xbf16>
    %c1 = arith.constant 1 : index
    %c0_8 = arith.constant 0 : index
    %c0_9 = arith.constant 0 : index
    %7 = vector.load %arg2[%c1, %c0_8, %c0_9] : memref<3x128x128xbf16, #tpu.memory_space<vmem>>, vector<1x128x128xbf16>
    %8 = vector.shape_cast %7 : vector<1x128x128xbf16> to vector<128x128xbf16>
    %cst_10 = arith.constant dense<0.000000e+00> : vector<16x128xf32>
    %9 = tpu.matmul %6, %8, %cst_10 {dimension_numbers = #tpu.dot_dimension_numbers<[1], [0], [0], [1], [0, 0, 1, 1], [], []>} : vector<16x128xbf16>, vector<128x128xbf16>, vector<16x128xf32> -> vector<16x128xf32>
    %10 = arith.addf %5, %9 : vector<16x128xf32>
    %c0_11 = arith.constant 0 : index
    %c0_12 = arith.constant 0 : index
    %11 = vector.load %arg10[%c0_11, %c0_12] : memref<16x128xf32, #tpu.memory_space<vmem>>, vector<16x128xf32>
    tpu.vector_store %arg10[%c0_11, %c0_12], %10 {strides = array<i32>} : memref<16x128xf32, #tpu.memory_space<vmem>>, vector<16x128xf32>,
    %c0_13 = arith.constant 0 : index
    %c0_14 = arith.constant 0 : index
    %12 = vector.load %arg10[%c0_13, %c0_14] : memref<16x128xf32, #tpu.memory_space<vmem>>, vector<16x128xf32>
    %c8 = arith.constant 8 : index
    %c0_15 = arith.constant 0 : index
    %13 = vector.load %arg1[%c8, %c0_15] : memref<24x128xbf16, #tpu.memory_space<vmem>>, vector<16x128xbf16>
    %c2 = arith.constant 2 : index
    %c0_16 = arith.constant 0 : index
    %c0_17 = arith.constant 0 : index
    %14 = vector.load %arg2[%c2, %c0_16, %c0_17] : memref<3x128x128xbf16, #tpu.memory_space<vmem>>, vector<1x128x128xbf16>
    %15 = vector.shape_cast %14 : vector<1x128x128xbf16> to vector<128x128xbf16>
    %cst_18 = arith.constant dense<0.000000e+00> : vector<16x128xf32>
    %16 = tpu.matmul %13, %15, %cst_18 {dimension_numbers = #tpu.dot_dimension_numbers<[1], [0], [0], [1], [0, 0, 1, 1], [], []>} : vector<16x128xbf16>, vector<128x128xbf16>, vector<16x128xf32> -> vector<16x128xf32>
    %17 = arith.addf %12, %16 : vector<16x128xf32>
    %c0_19 = arith.constant 0 : index
    %c0_20 = arith.constant 0 : index
    %18 = vector.load %arg10[%c0_19, %c0_20] : memref<16x128xf32, #tpu.memory_space<vmem>>, vector<16x128xf32>
    tpu.vector_store %arg10[%c0_19, %c0_20], %17 {strides = array<i32>} : memref<16x128xf32, #tpu.memory_space<vmem>>, vector<16x128xf32>,
    %c0_21 = arith.constant 0 : index
    %c0_22 = arith.constant 0 : index
    %19 = vector.load %arg10[%c0_21, %c0_22] : memref<16x128xf32, #tpu.memory_space<vmem>>, vector<16x128xf32>
    %c0_23 = arith.constant 0 : index
    %c0_24 = arith.constant 0 : index
    %20 = vector.load %arg3[%c0_23, %c0_24] : memref<1x128xf32, #tpu.memory_space<vmem>>, vector<1x128xf32>
    %21 = vector.broadcast %20 : vector<1x128xf32> to vector<16x128xf32>
    %22 = arith.addf %19, %21 : vector<16x128xf32>
    %cst_25 = arith.constant 0.000000e+00 : f32
    %23 = vector.broadcast %cst_25 : f32 to vector<16x128xf32>
    %24 = arith.maximumf %22, %23 : vector<16x128xf32>
    %cst_26 = arith.constant 0.000000e+00 : bf16
    %25 = vector.broadcast %cst_26 : bf16 to vector<8x128xbf16>
    %c0_27 = arith.constant 0 : index
    %c0_28 = arith.constant 0 : index
    %26 = vector.load %arg9[%c0_27, %c0_28] : memref<24x128xbf16, #tpu.memory_space<vmem>>, vector<8x128xbf16>
    tpu.vector_store %arg9[%c0_27, %c0_28], %25 {strides = array<i32>} : memref<24x128xbf16, #tpu.memory_space<vmem>>, vector<8x128xbf16>,
    %27 = arith.truncf %24 : vector<16x128xf32> to vector<16x128xbf16>
    %c8_29 = arith.constant 8 : index
    %c0_30 = arith.constant 0 : index
    %28 = vector.load %arg9[%c8_29, %c0_30] : memref<24x128xbf16, #tpu.memory_space<vmem>>, vector<16x128xbf16>
    tpu.vector_store %arg9[%c8_29, %c0_30], %27 {strides = array<i32>} : memref<24x128xbf16, #tpu.memory_space<vmem>>, vector<16x128xbf16>,
    %c4_31 = arith.constant 4 : index
    %c0_32 = arith.constant 0 : index
    %29 = vector.load %arg9[%c4_31, %c0_32] : memref<24x128xbf16, #tpu.memory_space<vmem>>, vector<16x128xbf16>
    %c0_33 = arith.constant 0 : index
    %c0_34 = arith.constant 0 : index
    %c0_35 = arith.constant 0 : index
    %30 = vector.load %arg4[%c0_33, %c0_34, %c0_35] : memref<3x128x128xbf16, #tpu.memory_space<vmem>>, vector<1x128x128xbf16>
    %31 = vector.shape_cast %30 : vector<1x128x128xbf16> to vector<128x128xbf16>
    %cst_36 = arith.constant dense<0.000000e+00> : vector<16x128xf32>
    %32 = tpu.matmul %29, %31, %cst_36 {dimension_numbers = #tpu.dot_dimension_numbers<[1], [0], [0], [1], [0, 0, 1, 1], [], []>} : vector<16x128xbf16>, vector<128x128xbf16>, vector<16x128xf32> -> vector<16x128xf32>
    %c0_37 = arith.constant 0 : index
    %c0_38 = arith.constant 0 : index
    %33 = vector.load %arg10[%c0_37, %c0_38] : memref<16x128xf32, #tpu.memory_space<vmem>>, vector<16x128xf32>
    tpu.vector_store %arg10[%c0_37, %c0_38], %32 {strides = array<i32>} : memref<16x128xf32, #tpu.memory_space<vmem>>, vector<16x128xf32>,
    %c0_39 = arith.constant 0 : index
    %c0_40 = arith.constant 0 : index
    %34 = vector.load %arg10[%c0_39, %c0_40] : memref<16x128xf32, #tpu.memory_space<vmem>>, vector<16x128xf32>
    %c6_41 = arith.constant 6 : index
    %c0_42 = arith.constant 0 : index
    %35 = vector.load %arg9[%c6_41, %c0_42] : memref<24x128xbf16, #tpu.memory_space<vmem>>, vector<16x128xbf16>
    %c1_43 = arith.constant 1 : index
    %c0_44 = arith.constant 0 : index
    %c0_45 = arith.constant 0 : index
    %36 = vector.load %arg4[%c1_43, %c0_44, %c0_45] : memref<3x128x128xbf16, #tpu.memory_space<vmem>>, vector<1x128x128xbf16>
    %37 = vector.shape_cast %36 : vector<1x128x128xbf16> to vector<128x128xbf16>
    %cst_46 = arith.constant dense<0.000000e+00> : vector<16x128xf32>
    %38 = tpu.matmul %35, %37, %cst_46 {dimension_numbers = #tpu.dot_dimension_numbers<[1], [0], [0], [1], [0, 0, 1, 1], [], []>} : vector<16x128xbf16>, vector<128x128xbf16>, vector<16x128xf32> -> vector<16x128xf32>
    %39 = arith.addf %34, %38 : vector<16x128xf32>
    %c0_47 = arith.constant 0 : index
    %c0_48 = arith.constant 0 : index
    %40 = vector.load %arg10[%c0_47, %c0_48] : memref<16x128xf32, #tpu.memory_space<vmem>>, vector<16x128xf32>
    tpu.vector_store %arg10[%c0_47, %c0_48], %39 {strides = array<i32>} : memref<16x128xf32, #tpu.memory_space<vmem>>, vector<16x128xf32>,
    %c0_49 = arith.constant 0 : index
    %c0_50 = arith.constant 0 : index
    %41 = vector.load %arg10[%c0_49, %c0_50] : memref<16x128xf32, #tpu.memory_space<vmem>>, vector<16x128xf32>
    %c8_51 = arith.constant 8 : index
    %c0_52 = arith.constant 0 : index
    %42 = vector.load %arg9[%c8_51, %c0_52] : memref<24x128xbf16, #tpu.memory_space<vmem>>, vector<16x128xbf16>
    %c2_53 = arith.constant 2 : index
    %c0_54 = arith.constant 0 : index
    %c0_55 = arith.constant 0 : index
    %43 = vector.load %arg4[%c2_53, %c0_54, %c0_55] : memref<3x128x128xbf16, #tpu.memory_space<vmem>>, vector<1x128x128xbf16>
    %44 = vector.shape_cast %43 : vector<1x128x128xbf16> to vector<128x128xbf16>
    %cst_56 = arith.constant dense<0.000000e+00> : vector<16x128xf32>
    %45 = tpu.matmul %42, %44, %cst_56 {dimension_numbers = #tpu.dot_dimension_numbers<[1], [0], [0], [1], [0, 0, 1, 1], [], []>} : vector<16x128xbf16>, vector<128x128xbf16>, vector<16x128xf32> -> vector<16x128xf32>
    %46 = arith.addf %41, %45 : vector<16x128xf32>
    %c0_57 = arith.constant 0 : index
    %c0_58 = arith.constant 0 : index
    %47 = vector.load %arg10[%c0_57, %c0_58] : memref<16x128xf32, #tpu.memory_space<vmem>>, vector<16x128xf32>
    tpu.vector_store %arg10[%c0_57, %c0_58], %46 {strides = array<i32>} : memref<16x128xf32, #tpu.memory_space<vmem>>, vector<16x128xf32>,
    %c0_59 = arith.constant 0 : index
    %c0_60 = arith.constant 0 : index
    %48 = vector.load %arg10[%c0_59, %c0_60] : memref<16x128xf32, #tpu.memory_space<vmem>>, vector<16x128xf32>
    %c0_61 = arith.constant 0 : index
    %c0_62 = arith.constant 0 : index
    %49 = vector.load %arg5[%c0_61, %c0_62] : memref<1x128xf32, #tpu.memory_space<vmem>>, vector<1x128xf32>
    %50 = vector.broadcast %49 : vector<1x128xf32> to vector<16x128xf32>
    %51 = arith.addf %48, %50 : vector<16x128xf32>
    %cst_63 = arith.constant 0.000000e+00 : f32
    %52 = vector.broadcast %cst_63 : f32 to vector<16x128xf32>
    %53 = arith.maximumf %51, %52 : vector<16x128xf32>
    %c8_64 = arith.constant 8 : index
    %c0_65 = arith.constant 0 : index
    %54 = vector.load %arg1[%c8_64, %c0_65] : memref<24x128xbf16, #tpu.memory_space<vmem>>, vector<16x128xbf16>
    %c0_66 = arith.constant 0 : index
    %c0_67 = arith.constant 0 : index
    %55 = vector.load %arg6[%c0_66, %c0_67] : memref<128x128xbf16, #tpu.memory_space<vmem>>, vector<128x128xbf16>
    %cst_68 = arith.constant dense<0.000000e+00> : vector<16x128xf32>
    %56 = tpu.matmul %54, %55, %cst_68 {dimension_numbers = #tpu.dot_dimension_numbers<[1], [0], [0], [1], [0, 0, 1, 1], [], []>} : vector<16x128xbf16>, vector<128x128xbf16>, vector<16x128xf32> -> vector<16x128xf32>
    %c0_69 = arith.constant 0 : index
    %c0_70 = arith.constant 0 : index
    %57 = vector.load %arg7[%c0_69, %c0_70] : memref<1x128xf32, #tpu.memory_space<vmem>>, vector<1x128xf32>
    %58 = vector.broadcast %57 : vector<1x128xf32> to vector<16x128xf32>
    %59 = arith.addf %56, %58 : vector<16x128xf32>
    %60 = arith.addf %53, %59 : vector<16x128xf32>
    %cst_71 = arith.constant 0.000000e+00 : f32
    %61 = vector.broadcast %cst_71 : f32 to vector<16x128xf32>
    %62 = arith.maximumf %60, %61 : vector<16x128xf32>
    %c0_72 = arith.constant 0 : index
    %c0_73 = arith.constant 0 : index
    %63 = vector.load %arg8[%c0_72, %c0_73] : memref<16x128xf32, #tpu.memory_space<vmem>>, vector<16x128xf32>
    tpu.vector_store %arg8[%c0_72, %c0_73], %62 {strides = array<i32>} : memref<16x128xf32, #tpu.memory_space<vmem>>, vector<16x128xf32>,
    return
  }
  func.func @transform_0(%arg0: i32) -> (i32, i32) {
    %c0_i32 = arith.constant 0 : i32
    %c0_i32_0 = arith.constant 0 : i32
    return %arg0, %c0_i32 : i32, i32
  }
  func.func @transform_1(%arg0: i32) -> (i32, i32, i32) {
    %c0_i32 = arith.constant 0 : i32
    %c0_i32_0 = arith.constant 0 : i32
    %c0_i32_1 = arith.constant 0 : i32
    %c0_i32_2 = arith.constant 0 : i32
    return %c0_i32, %c0_i32_0, %c0_i32_1 : i32, i32, i32
  }
  func.func @transform_2(%arg0: i32) -> (i32, i32) {
    %c0_i32 = arith.constant 0 : i32
    %c0_i32_0 = arith.constant 0 : i32
    %c0_i32_1 = arith.constant 0 : i32
    return %c0_i32, %c0_i32_0 : i32, i32
  }
  func.func @transform_3(%arg0: i32) -> (i32, i32, i32) {
    %c0_i32 = arith.constant 0 : i32
    %c0_i32_0 = arith.constant 0 : i32
    %c0_i32_1 = arith.constant 0 : i32
    %c0_i32_2 = arith.constant 0 : i32
    return %c0_i32, %c0_i32_0, %c0_i32_1 : i32, i32, i32
  }
  func.func @transform_4(%arg0: i32) -> (i32, i32) {
    %c0_i32 = arith.constant 0 : i32
    %c0_i32_0 = arith.constant 0 : i32
    %c0_i32_1 = arith.constant 0 : i32
    return %c0_i32, %c0_i32_0 : i32, i32
  }
  func.func @transform_5(%arg0: i32) -> (i32, i32) {
    %c0_i32 = arith.constant 0 : i32
    %c0_i32_0 = arith.constant 0 : i32
    %c0_i32_1 = arith.constant 0 : i32
    return %c0_i32, %c0_i32_0 : i32, i32
  }
  func.func @transform_6(%arg0: i32) -> (i32, i32) {
    %c0_i32 = arith.constant 0 : i32
    %c0_i32_0 = arith.constant 0 : i32
    %c0_i32_1 = arith.constant 0 : i32
    return %c0_i32, %c0_i32_0 : i32, i32
  }
  func.func @transform_7(%arg0: i32) -> (i32, i32) {
    %c0_i32 = arith.constant 0 : i32
    %c0_i32_0 = arith.constant 0 : i32
    return %arg0, %c0_i32 : i32, i32
  }
}

</mosaic_0001>

<bundles_post_ra>
// kernel: tpu_custom_call.1
= control target key start
LH: loop header
LB: loop body
LE: loop exit
PB: predicated region body
PF: predicated region fallthrough
CT: control target
= control target key end

     0   :  { %12 = vsyncpa [#allocation5], 0  ;;  %s2417_s0 = inlined_call_operand.hbm [shape: bf16[48,128], index: 0, kind: input, shape index: {}]   ;;  %s2418_s1 = inlined_call_operand.hbm [shape: bf16[3,128,128], index: 1, kind: input, shape index: {}]   ;;  %s2419_s2 = inlined_call_operand.vmem [shape: f32[1,128], index: 2, kind: input, shape index: {}]   ;;  %s2420_s3 = inlined_call_operand.hbm [shape: bf16[3,128,128], index: 3, kind: input, shape index: {}]   ;;  %s2421_s4 = inlined_call_operand.vmem [shape: f32[1,128], index: 4, kind: input, shape index: {}]   ;;  %s2422_s5 = inlined_call_operand.hbm [shape: bf16[128,128], index: 5, kind: input, shape index: {}]   ;;  %s2423_s6 = inlined_call_operand.vmem [shape: f32[1,128], index: 6, kind: input, shape index: {}]   ;;  %s2424_s7 = inlined_call_operand.hbm [shape: f32[32,128], index: 7, kind: output, shape index: {}]  }
   0x1   :  { %14 = vsyncpa [#allocation5 + $0x1], 0 }
   0x2   :  { %15 = vsyncpa [#allocation8], 0 }
   0x3   :  { %16 = vsyncpa [#allocation11], 0 }
   0x4   :  { %17 = vsyncpa [#allocation6], 0 }
   0x5   :  { %19 = vsyncpa [#allocation6 + $0x1], 0  ;;  %s2054_s24 = smov 0   ;;  %s2056_s25 = smov 0  }
   0x6   :  { %s2058_s26 = smov 0   ;;  %s2060_s27 = smov 0  }
   0x7 LB: > { %s2075_s28 = sadd.s32 4294967295, %s2000_s27   ;;  %s1363_s29 = sadd.s32 4294967294, %s2000_s27   ;;  %s2000_s27 = sphi %s2060_s27, %s2454_s27   ;;  %s1996_s26 = sphi %s2058_s26, %s2453_s26   ;;  %s1992_s25 = sphi %s2056_s25, %s2452_s25   ;;  %s1988_s24 = sphi %s2054_s24, %s2451_s24  }
   0x8   : > { %p45_p0 = scmp.ne.s32.totalorder %s1992_s25, %s1988_s24  ;;  %p2425_p1 = scmp.eq.s32.totalorder %s2075_s28, 0 }
   0x9   : > { %p201_p3 = scmp.eq.s32.totalorder %s1363_s29, 1  ;;  %p1364_p5 = scmp.ge.s32.totalorder %s2000_s27, 1 }
   0xa   : > { %p2084_p4 = por %p2425_p1, %p45_p0  ;;  %p208_p7 = scmp.lt.s32.totalorder %s2000_s27, 3 }
   0xb   : > { %p2089_p6 = por %p201_p3, %p45_p0  ;;  %s2002_s10 = smov [#allocation7]  }
   0xc   : > { %s2431_s30 = scalar_select %p2084_p4, 1, 0 }
   0xd   : > { %s2432_s8 = scalar_select %p2089_p6, 1, 0 }
   0xe   : > { %p2094_p8 = pnand %p1364_p5, %p208_p7  ;;  %s220_s11 = sshll.u32 %s2002_s10, 4  ;;  %s2098_s11 = int_to_ptr.vmem [resolvable:$true] %s220_s11 }
   0xf   : > { %2433 = sst [smem:[#allocation17_spill]] %s2432_s8  ;;  %s2003_s13 = smov [#allocation9]  }
  0x10   : > { %s2434_s9 = scalar_select %p2094_p8, 1, 0 }
  0x11   : > { %p1677_p9 = pneg %p2094_p8  ;;  %s236_s14 = sshll.u32 %s2003_s13, 4  ;;  %s2109_s14 = int_to_ptr.vmem [resolvable:$true] %s236_s14 }
  0x12   : > { %s2004_s15 = smov [#allocation10]   ;;  %s1812_s19 = scalar_lea.hbm %s2418_s1, 3072 }
  0x13   : > { %p2105_p11 = pnand %p1677_p9, %p2425_p1  ;;  %s2111_s16 = sshll.u32 %s2004_s15, 4  ;;  %s253_s16 = int_to_ptr.vmem [resolvable:$true] %s2111_s16 }
  0x14   : > { %p1813_p12 = scmp.ne.s32.totalorder %s2418_s1, %s1812_s19  ;;  %p1819_p5 = scmp.lt.u32.totalorder %s1812_s19, %s2418_s1 }
  0x15   : > { %p2121_p13 = pneg %p2105_p11 }
  0x17   : > { %p1815_p0 = pnand %p2121_p13, %p1813_p12 }
  0x19   : > { %p1816_p3 = pneg %p1815_p0 }
  0x1b   : > { %p1821_p7 = pnand %p1819_p5, %p1816_p3 }
  0x1d   : > { %1824 = shalt.err (!%p1821_p7)
}
  0x1e   : > { %s1825_s10 = scalar_lea.vmem %s2098_s11, 3072  ;;  %p1833_p2 = scmp.lt.s32.totalorder %s2098_s11, %s2098_s11 }
  0x1f   : > { %p1826_p9 = scmp.ne.s32.totalorder %s2098_s11, %s1825_s10  ;;  %p1834_p6 = scmp.lt.s32.totalorder %s1825_s10, %s1825_s10 }
  0x21   : > { %p1828_p10 = pnand %p1826_p9, %p2121_p13  ;;  %p1835_p12 = por %p1834_p6, %p1833_p2 }
  0x23   : > { %p1829_p1 = pneg %p1828_p10 }
  0x25   : > { %p1836_p0 = pnand %p1835_p12, %p1829_p1 }
  0x27   : > { %1839 = shalt.err (!%p1836_p0)
}
  0x28   : > { %s2429_s13 = smov 64   ;;  %s2430_s15 = smov 4  }
  0x29   : > { %1680 = dma.hbm_to_vmem [thread:$0]  (!%p2105_p11), %s2418_s1, 3072, %s2098_s11, [#allocation8], %s2429_s13, %s2429_s13, %s2430_s15  }
  0x2a   : > { %s1840_s21 = scalar_lea.hbm %s2420_s3, 3072 }
  0x2b   : > { %p1841_p1 = scmp.ne.s32.totalorder %s2420_s3, %s1840_s21  ;;  %p1847_p10 = scmp.lt.u32.totalorder %s1840_s21, %s2420_s3 }
  0x2d   : > { %p1843_p2 = pnand %p1841_p1, %p2121_p13 }
  0x2f   : > { %p1844_p6 = pneg %p1843_p2 }
  0x31   : > { %p1849_p3 = pnand %p1847_p10, %p1844_p6 }
  0x33   : > { %1852 = shalt.err (!%p1849_p3)
}
  0x34   : > { %s1853_s11 = scalar_lea.vmem %s2109_s14, 3072  ;;  %p1861_p12 = scmp.lt.s32.totalorder %s2109_s14, %s2109_s14 }
  0x35   : > { %p1854_p5 = scmp.ne.s32.totalorder %s2109_s14, %s1853_s11  ;;  %p1862_p0 = scmp.lt.s32.totalorder %s1853_s11, %s1853_s11 }
  0x37   : > { %p1856_p7 = pnand %p1854_p5, %p2121_p13  ;;  %p1863_p1 = por %p1862_p0, %p1861_p12 }
  0x39   : > { %p1857_p9 = pneg %p1856_p7 }
  0x3b   : > { %p1864_p2 = pnand %p1863_p1, %p1857_p9 }
  0x3d   : > { %1867 = shalt.err (!%p1864_p2)
}
  0x3e   : > { %1683 = dma.hbm_to_vmem [thread:$0]  (!%p2105_p11), %s2420_s3, 3072, %s2109_s14, [#allocation8], %s2429_s13, %s2429_s13, %s2430_s15  }
  0x3f   : > { %s1868_s20 = scalar_lea.hbm %s2422_s5, 1024 }
  0x40   : > { %p1869_p6 = scmp.ne.s32.totalorder %s2422_s5, %s1868_s20  ;;  %p1875_p5 = scmp.lt.u32.totalorder %s1868_s20, %s2422_s5 }
  0x42   : > { %p1871_p10 = pnand %p1869_p6, %p2121_p13 }
  0x44   : > { %p1872_p3 = pneg %p1871_p10 }
  0x46   : > { %p1877_p7 = pnand %p1875_p5, %p1872_p3 }
  0x48   : > { %1880 = shalt.err (!%p1877_p7)
}
  0x49   : > { %s1881_s11 = scalar_lea.vmem %s253_s16, 1024  ;;  %p1889_p1 = scmp.lt.s32.totalorder %s253_s16, %s253_s16 }
  0x4a   : > { %p1882_p9 = scmp.ne.s32.totalorder %s253_s16, %s1881_s11  ;;  %p1890_p2 = scmp.lt.s32.totalorder %s1881_s11, %s1881_s11 }
  0x4c   : > { %p1884_p12 = pnand %p1882_p9, %p2121_p13  ;;  %p1891_p4 = por %p1890_p2, %p1889_p1 }
  0x4e   : > { %p1885_p0 = pneg %p1884_p12 }
  0x50   : > { %p1892_p8 = pnand %p1891_p4, %p1885_p0 }
  0x52   : > { %1895 = shalt.err (!%p1892_p8)
}
  0x53   : > { %1686 = dma.hbm_to_vmem [thread:$0]  (!%p2105_p11), %s2422_s5, 1024, %s253_s16, [#allocation11], %s2429_s13, %s2429_s13, %s2430_s15  }
  0x54   : > { %s2194_s22 = sadd.s32 1, %s2000_s27   ;;  %s32_s17 = sadd.s32 1, %s1996_s26 }
  0x55   : > { %s29_s12 = ssub.s32 %s2000_s27, %s2194_s22  ;;  %p39_p8 = scmp.ne.s32.totalorder %s1996_s26, %s1992_s25 }
  0x56   : > { %p30_p4 = scmp.eq.s32.totalorder %s29_s12, 0  ;;  %p40_p13 = scmp.eq.s32.totalorder %s2000_s27, 0 }
  0x57   : > { %p1698_p6 = scmp.lt.s32.totalorder %s2000_s27, 2  ;;  %p2437_p3 = scmp.eq.s32.totalorder %s2075_s28, 1 }
  0x58   : > { %s2204_s18 = scalar_select %p30_p4, %s1996_s26, %s32_s17  }
  0x59   : > { %p41_p10 = por %p40_p13, %p39_p8  ;;  %p2208_p5 = por %p2437_p3, %p39_p8 }
  0x5a   : > { %s269_s20 = sand.u32 1, %s1996_s26   ;;  %s1452_s21 = smul.u32 192, %s2000_s27 }
  0x5b   : > { %s1659_s16 = smul.u32 12, %s269_s20  ;;  %p2214_p11 = pnand %p1698_p6, %p41_p10 }
  0x5c   : > { %s2221_s11 = scalar_lea.hbm %s2417_s0, %s1452_s21  ;;  %s2225_s12 = scalar_lea.sflag [#allocation5], %s269_s20 }
  0x5d   : > { %s273_s14 = scalar_lea.vmem [#allocation4], %s1659_s16  ;;  %s1896_s17 = scalar_lea.hbm %s2221_s11, 192 }
  0x5e   : > { %s280_s8 = sshll.u32 %s273_s14, 4  ;;  %p1897_p7 = scmp.ne.s32.totalorder %s2221_s11, %s1896_s17  ;;  %s2223_s8 = int_to_ptr.vmem [resolvable:$true] %s280_s8 }
  0x5f   : > { %p1898_p9 = pneg %p2214_p11  ;;  %s1901_s10 = scalar_lea.hbm %s2417_s0, 384 }
  0x60   : > { %p1902_p1 = scmp.lt.u32.totalorder %s2221_s11, %s2417_s0  ;;  %p1903_p2 = scmp.lt.u32.totalorder %s1901_s10, %s1896_s17 }
  0x61   : > { %p1899_p12 = pnand %p1898_p9, %p1897_p7  ;;  %p1905_p8 = scmp.lt.u32.totalorder %s1896_s17, %s2221_s11 }
  0x62   : > { %p1904_p4 = por %p1903_p2, %p1902_p1 }
  0x63   : > { %p1900_p0 = pneg %p1899_p12 }
  0x64   : > { %p1906_p13 = por %p1905_p8, %p1904_p4 }
  0x66   : > { %p1907_p6 = pnand %p1906_p13, %p1900_p0 }
  0x68   : > { %1910 = shalt.err (!%p1907_p6)
}
  0x69   : > { %s1911_s20 = scalar_lea.vmem %s2223_s8, 192  ;;  %s2007_s16 = smov [#allocation4]  }
  0x6a   : > { %p1912_p10 = scmp.ne.s32.totalorder %s2223_s8, %s1911_s20  ;;  %s1916_s14 = sshll.u32 %s2007_s16, 4  ;;  %s1917_s14 = int_to_ptr.vmem [resolvable:$false] %s1916_s14 }
  0x6b   : > { %s1918_s13 = scalar_lea.vmem %s1917_s14, 384  ;;  %p1919_p12 = scmp.lt.s32.totalorder %s2223_s8, %s1917_s14 }
  0x6c   : > { %p1914_p3 = pnand %p1912_p10, %p1898_p9  ;;  %p1920_p1 = scmp.lt.s32.totalorder %s1918_s13, %s1911_s20 }
  0x6e   : > { %p1915_p7 = pneg %p1914_p3  ;;  %p1921_p2 = por %p1920_p1, %p1919_p12 }
  0x70   : > { %p1922_p4 = pnand %p1921_p2, %p1915_p7 }
  0x72   : > { %1925 = shalt.err (!%p1922_p4)
}
  0x73   : > { %s2440_s15 = smov 4   ;;  %s2441_s17 = smov 64  }
  0x74   : > { %1690 = dma.hbm_to_vmem [thread:$0]  (!%p2214_p11), %s2221_s11, 192, %s2223_s8, %s2225_s12, %s2441_s17, %s2441_s17, %s2440_s15  }
  0x75   : > { %p2442_p9 = scmp.ne.s32.totalorder %s2434_s9, 0 }
  0x76   : > { %s2259_s21 = sand.u32 (!%p2442_p9), 1, %s1992_s25   ;;  %p2443_p0 = scmp.ne.s32.totalorder (!%p2442_p9), %s2431_s30, 0 }
  0x77   : > { %292 = sbr.rel (%p2442_p9) target bundleno = 704 (0x2c0), region = 48  ;;  %s295_s10 = scalar_lea.sflag (!%p2442_p9), [#allocation5], %s2259_s21 }
  0x78   : > { %s1660_s29 = smul.u32 (!%p2442_p9), 12, %s2259_s21 }
  0x7a   : > { %s2263_s20 = scalar_lea.vmem (!%p2442_p9), [#allocation4], %s1660_s29 }
  0x7e   : > { %1971 = dma.done.wait (%p2443_p0), %s295_s10, 192  }
  0x7f   : > { %1973 = vsyncadd (%p2443_p0), %s295_s10, 4294967104  ;;  %p2444_p11 = scmp.eq.s32.totalorder %s2075_s28, 0 }
  0x81   : > { %1975 = dma.done.wait (%p2444_p11), [#allocation8], 6144   ;;  %p2445_p8 = pmov %p2444_p11 }
  0x83   : > { %1977 = vsyncadd (%p2445_p8), [#allocation8], 4294961152  ;;  %p2446_p13 = pmov %p2445_p8 }
  0x84   : > { %p2447_p6 = pmov %p2445_p8 }
  0x85   : > { %1979 = dma.done.wait (%p2446_p13), [#allocation11], 1024  }
  0x86   : > { %1981 = vsyncadd (%p2447_p6), [#allocation11], 4294966272  ;;  %v2008_v0 = vmov 0.0   ;;  %vm2009_vm0 = vmmov 0   ;;  %v1745_v1 = vld [vmem:[#allocation7] sm:$0xff]   ;;  %v1747_v3 = vld [vmem:[#allocation7 + $0x8] sm:$0xff]  }
  0x87   : > { %1519 = vmatprep.subr.bf16.mxu0 %v2008_v0  ;;  %1539 = vmatprep.subr.bf16.mxu1 %v2008_v0  ;;  %v1746_v2 = vld [vmem:[#allocation7 + $0x40] sm:$0xff]   ;;  %v1748_v4 = vld [vmem:[#allocation7 + $0x48] sm:$0xff]   ;;  %v1749_v5 = vld [vmem:[#allocation7 + $0x10] sm:$0xff]   ;;  %vm371_vm1 = vcmask 1045504   ;;  %vm497_vm2 = vcmask 1044480   ;;  %v2010_v47 = vmov 0  }
  0x88   : > { %1535 = vmatprep.mubr.msk.bf16.mxu0 %vm2009_vm0, %v2008_v0  ;;  %1555 = vmatprep.mubr.msk.bf16.mxu1 %vm2009_vm0, %v2008_v0  ;;  %v1750_v6 = vld [vmem:[#allocation7 + $0x50] sm:$0xff]   ;;  %v1751_v7 = vld [vmem:[#allocation7 + $0x18] sm:$0xff]   ;;  %v1753_v9 = vld [vmem:[#allocation7 + $0x20] sm:$0xff]   ;;  %728 = vst [vmem:[#allocation2] sm:$0xf] %v2010_v47  ;;  %s1374_s8 = sshll.u32 %s2259_s21, 4 }
  0x89   : > { %1520 = vmatpush3.bf16.msra.mxu0 %v1745_v1  ;;  %1540 = vmatpush3.bf16.msra.mxu1 %v1746_v2  ;;  %v1752_v8 = vld [vmem:[#allocation7 + $0x58] sm:$0xff]   ;;  %v1754_v10 = vld [vmem:[#allocation7 + $0x60] sm:$0xff]   ;;  %v1755_v11 = vld [vmem:[#allocation7 + $0x28] sm:$0xff]   ;;  %s340_s14 = scalar_lea.vmem [#allocation12], %s1374_s8  ;;  %s1455_s15 = sshll.u32 %s2075_s28, 8 }
  0x8a   : > { %1521 = vmatprep.subr.bf16.mxu0 %v2008_v0  ;;  %1541 = vmatprep.subr.bf16.mxu1 %v2008_v0  ;;  %v1756_v12 = vld [vmem:[#allocation7 + $0x68] sm:$0xff]   ;;  %v1757_v13 = vld [vmem:[#allocation7 + $0x30] sm:$0xff]   ;;  %v1759_v19 = vld [vmem:[#allocation7 + $0x38] sm:$0xff]   ;;  %s1261_s13 = sshll.u32 %s340_s14, 4  ;;  %s2373_s10 = scalar_lea.hbm %s2424_s7, %s1455_s15  ;;  %s2368_s13 = int_to_ptr.vmem [resolvable:$true] %s1261_s13 }
  0x8b   : > { %v1762_v14 = vld [vmem:[%s2263_s20 + $0x8] ss:$0 sps:$4 sm:$0x33]   ;;  %v1761_v16 = vld [vmem:[%s2263_s20] sm:$0xfc]   ;;  %v1765_v25 = vld [vmem:[#allocation7 + $0x80] sm:$0xff]  }
  0x8c   : > { %v1758_v15 = vld [vmem:[#allocation7 + $0x70] sm:$0xff]   ;;  %v1760_v20 = vld [vmem:[#allocation7 + $0x78] sm:$0xff]   ;;  %v372_v21 = vrot.slane %v1761_v16, 2  ;;  %v373_v22 = vrot.slane %v1762_v14, 2  ;;  %v1766_v28 = vld [vmem:[#allocation7 + $0x88] sm:$0xff]   ;;  %s1926_s30 = scalar_lea.vmem %s2368_s13, 256 }
  0x8d   : > { %1522 = vmatpush3.bf16.msra.mxu0 %v1747_v3  ;;  %1542 = vmatpush3.bf16.msra.mxu1 %v1748_v4  ;;  %v1764_v17 = vld [vmem:[%s2263_s20 + $0x8] ss:$0 sps:$4 sm:$0x77]   ;;  %v1763_v18 = vld [vmem:[%s2263_s20] sm:$0xf8]   ;;  %v1769_v31 = vld [vmem:[#allocation7 + $0xa0] sm:$0xff]   ;;  %p1927_p10 = scmp.ne.s32.totalorder %s2368_s13, %s1926_s30 }
  0x8e   : > { %1523 = vmatprep.subr.bf16.mxu0 %v2008_v0  ;;  %1543 = vmatprep.subr.bf16.mxu1 %v2008_v0  ;;  %v498_v23 = vrot.slane %v1763_v18, 3  ;;  %v499_v24 = vrot.slane %v1764_v17, 3  ;;  %v374_v26 = vsel %vm371_vm1, %v372_v21, %v373_v22  ;;  %v1767_v29 = vld [vmem:[#allocation7 + $0x90] sm:$0xff]   ;;  %v1768_v30 = vld [vmem:[#allocation7 + $0x98] sm:$0xff]   ;;  %v1770_v32 = vld [vmem:[#allocation7 + $0xa8] sm:$0xff]   ;;  %s2011_s28 = smov [#allocation12]  }
  0x8f   : > { %v1771_v33 = vld [vmem:[#allocation7 + $0xb0] sm:$0xff]   ;;  %v1772_v34 = vld [vmem:[#allocation7 + $0xb8] sm:$0xff]   ;;  %v1774_v36 = vld [vmem:[#allocation9] sm:$0xff]   ;;  %p1928_p3 = pnand %p1927_p10, %p2208_p5  ;;  %s1930_s9 = sshll.u32 %s2011_s28, 4  ;;  %s1931_s9 = int_to_ptr.vmem [resolvable:$false] %s1930_s9 }
  0x90   : > { %v500_v27 = vsel %vm497_vm2, %v498_v23, %v499_v24  ;;  %v1773_v35 = vld [vmem:[%s2263_s20 + $0x4] sm:$0xff]   ;;  %v1775_v37 = vld [vmem:[#allocation9 + $0x40] sm:$0xff]   ;;  %s1932_s23 = scalar_lea.vmem %s1931_s9, 512  ;;  %p1933_p12 = scmp.lt.s32.totalorder %s2368_s13, %s1931_s9 }
  0x91   : > { %1524 = vmatpush3.bf16.msra.mxu0 %v1749_v5  ;;  %1544 = vmatpush3.bf16.msra.mxu1 %v1750_v6  ;;  %v1776_v38 = vld [vmem:[#allocation9 + $0x8] sm:$0xff]   ;;  %v1778_v40 = vld [vmem:[#allocation9 + $0x10] sm:$0xff]   ;;  %v1780_v42 = vld [vmem:[#allocation9 + $0x18] sm:$0xff]   ;;  %p1929_p7 = pneg %p1928_p3  ;;  %p1934_p1 = scmp.lt.s32.totalorder %s1932_s23, %s1926_s30 }
  0x92   : > { %1525 = vmatprep.subr.bf16.mxu0 %v2008_v0  ;;  %1545 = vmatprep.subr.bf16.mxu1 %v2008_v0  ;;  %v1777_v39 = vld [vmem:[#allocation9 + $0x48] sm:$0xff]   ;;  %v1779_v41 = vld [vmem:[#allocation9 + $0x50] sm:$0xff]   ;;  %v1781_v43 = vld [vmem:[#allocation9 + $0x58] sm:$0xff]  }
  0x93   : > { %v1782_v44 = vld [vmem:[#allocation9 + $0x20] sm:$0xff]   ;;  %v1784_v46 = vld [vmem:[#allocation9 + $0x28] sm:$0xff]   ;;  %v1786_v49 = vld [vmem:[#allocation9 + $0x30] sm:$0xff]   ;;  %p1935_p2 = por %p1934_p1, %p1933_p12 }
  0x94   : > { %v1783_v45 = vld [vmem:[#allocation9 + $0x60] sm:$0xff]   ;;  %v1785_v48 = vld [vmem:[#allocation9 + $0x68] sm:$0xff]   ;;  %v1787_v50 = vld [vmem:[#allocation9 + $0x70] sm:$0xff]  }
  0x95   : > { %1526 = vmatpush3.bf16.msra.mxu0 %v1751_v7  ;;  %1546 = vmatpush3.bf16.msra.mxu1 %v1752_v8  ;;  %v1788_v51 = vld [vmem:[#allocation9 + $0x38] sm:$0xff]   ;;  %v1795_v22 = vld [vmem:[#allocation10] sm:$0xff]   ;;  %p1936_p4 = pnand %p1935_p2, %p1929_p7 }
  0x96   : > { %1527 = vmatprep.subr.bf16.mxu0 %v2008_v0  ;;  %1547 = vmatprep.subr.bf16.mxu1 %v2008_v0  ;;  %v1789_v52 = vld [vmem:[#allocation9 + $0x78] sm:$0xff]  }
  0x97   : > { %v1404_v1 = vld [vmem:[%s2419_s2] ss:$0 sm:$0xff] }
  0x99   : > { %1528 = vmatpush3.bf16.msra.mxu0 %v1753_v9  ;;  %1548 = vmatpush3.bf16.msra.mxu1 %v1754_v10 }
  0x9a   : > { %1529 = vmatprep.subr.bf16.mxu0 %v2008_v0  ;;  %1549 = vmatprep.subr.bf16.mxu1 %v2008_v0 }
  0x9d   : > { %1530 = vmatpush3.bf16.msra.mxu0 %v1755_v11  ;;  %1550 = vmatpush3.bf16.msra.mxu1 %v1756_v12 }
  0x9e   : > { %1531 = vmatprep.subr.bf16.mxu0 %v2008_v0  ;;  %1551 = vmatprep.subr.bf16.mxu1 %v2008_v0 }
  0xa1   : > { %1532 = vmatpush3.bf16.msra.mxu0 %v1757_v13  ;;  %1552 = vmatpush3.bf16.msra.mxu1 %v1758_v15 }
  0xa2   : > { %1533 = vmatprep.subr.bf16.mxu0 %v2008_v0  ;;  %1553 = vmatprep.subr.bf16.mxu1 %v2008_v0 }
  0xa5   : > { %1534 = vmatpush3.bf16.msra.mxu0 %v1759_v19  ;;  %1554 = vmatpush3.bf16.msra.mxu1 %v1760_v20  ;;  %v1794_v19 = vld [vmem:[#allocation9 + $0x80] sm:$0xff]  }
  0xa6   : > { %1559 = vmatprep.subr.bf16.mxu0 %v2008_v0  ;;  %1579 = vmatprep.subr.bf16.mxu1 %v2008_v0 }
  0xa8   : > { %1536 = vmatmul.mubr.bf16.vlgmr.msra.gmra.mrb[0].mxu0 %v374_v26  ;;  %1556 = vmatmul.mubr.bf16.vlgmr.msra.gmra.mrb[0].mxu1 %v500_v27  ;;  %v1797_v26 = vld [vmem:[#allocation10 + $0x8] sm:$0xff]   ;;  %v1798_v27 = vld [vmem:[#allocation9 + $0x90] sm:$0xff]  }
  0xa9   : > { %1560 = vmatpush3.bf16.msra.mxu0 %v1765_v25  ;;  %1575 = vmatprep.mubr.msk.bf16.mxu0 %vm2009_vm0, %v2008_v0  ;;  %v1796_v25 = vld [vmem:[#allocation9 + $0x88] sm:$0xff]  }
  0xaa   : > { %1561 = vmatprep.subr.bf16.mxu0 %v2008_v0  ;;  %1595 = vmatprep.mubr.msk.bf16.mxu1 %vm2009_vm0, %v2008_v0 }
  0xab   : > { %1580 = vmatpush3.bf16.msra.mxu1 %v1774_v36  ;;  %v1807_v36 = vld [vmem:[#allocation10 + $0x30] sm:$0xff]  }
  0xac   : > { %1581 = vmatprep.subr.bf16.mxu1 %v2008_v0 }
  0xad   : > { %1562 = vmatpush3.bf16.msra.mxu0 %v1766_v28  ;;  %v1799_v28 = vld [vmem:[#allocation10 + $0x10] sm:$0xff]  }
  0xae   : > { %1563 = vmatprep.subr.bf16.mxu0 %v2008_v0 }
  0xaf   : > { %1582 = vmatpush3.bf16.msra.mxu1 %v1776_v38  ;;  %v1809_v38 = vld [vmem:[#allocation10 + $0x38] sm:$0xff]  }
  0xb0   : > { %1583 = vmatprep.subr.bf16.mxu1 %v2008_v0 }
  0xb1   : > { %1564 = vmatpush3.bf16.msra.mxu0 %v1767_v29  ;;  %v1800_v29 = vld [vmem:[#allocation9 + $0x98] sm:$0xff]  }
  0xb2   : > { %1565 = vmatprep.subr.bf16.mxu0 %v2008_v0 }
  0xb3   : > { %1584 = vmatpush3.bf16.msra.mxu1 %v1778_v40 }
  0xb4   : > { %1585 = vmatprep.subr.bf16.mxu1 %v2008_v0 }
  0xb5   : > { %1566 = vmatpush3.bf16.msra.mxu0 %v1768_v30  ;;  %v1801_v30 = vld [vmem:[#allocation10 + $0x18] sm:$0xff]  }
  0xb6   : > { %1567 = vmatprep.subr.bf16.mxu0 %v2008_v0 }
  0xb7   : > { %1586 = vmatpush3.bf16.msra.mxu1 %v1780_v42 }
  0xb8   : > { %1587 = vmatprep.subr.bf16.mxu1 %v2008_v0 }
  0xb9   : > { %1568 = vmatpush3.bf16.msra.mxu0 %v1769_v31  ;;  %v1802_v31 = vld [vmem:[#allocation9 + $0xa0] sm:$0xff]  }
  0xba   : > { %1569 = vmatprep.subr.bf16.mxu0 %v2008_v0 }
  0xbb   : > { %1588 = vmatpush3.bf16.msra.mxu1 %v1782_v44 }
  0xbc   : > { %1589 = vmatprep.subr.bf16.mxu1 %v2008_v0 }
  0xbd   : > { %1570 = vmatpush3.bf16.msra.mxu0 %v1770_v32  ;;  %v1803_v32 = vld [vmem:[#allocation10 + $0x20] sm:$0xff]  }
  0xbe   : > { %1571 = vmatprep.subr.bf16.mxu0 %v2008_v0 }
  0xbf   : > { %1590 = vmatpush3.bf16.msra.mxu1 %v1784_v46 }
  0xc0   : > { %1591 = vmatprep.subr.bf16.mxu1 %v2008_v0 }
  0xc1   : > { %1572 = vmatpush3.bf16.msra.mxu0 %v1771_v33  ;;  %v1804_v33 = vld [vmem:[#allocation9 + $0xa8] sm:$0xff]  }
  0xc2   : > { %1573 = vmatprep.subr.bf16.mxu0 %v2008_v0 }
  0xc3   : > { %1592 = vmatpush3.bf16.msra.mxu1 %v1786_v49 }
  0xc4   : > { %1593 = vmatprep.subr.bf16.mxu1 %v2008_v0 }
  0xc5   : > { %1574 = vmatpush3.bf16.msra.mxu0 %v1772_v34  ;;  %v1805_v34 = vld [vmem:[#allocation10 + $0x28] sm:$0xff]  }
  0xc6   : > { %1599 = vmatprep.subr.bf16.mxu0 %v2008_v0 }
  0xc7   : > { %1594 = vmatpush3.bf16.msra.mxu1 %v1788_v51 }
  0xc8   : > { %1576 = vmatmul.mubr.bf16.vlgmr.msra.gmra.mrb[4].mxu0 %v1773_v35  ;;  %1619 = vmatprep.subr.bf16.mxu1 %v2008_v0  ;;  %v1806_v35 = vld [vmem:[#allocation9 + $0xb0] sm:$0xff]  }
  0xc9   : > { %1615 = vmatprep.mubr.msk.bf16.mxu0 %vm2009_vm0, %v2008_v0  ;;  %1600 = vmatpush3.bf16.msra.mxu0 %v1775_v37  ;;  %v1808_v37 = vld [vmem:[#allocation9 + $0xb8] sm:$0xff]  }
  0xca   : > { %1601 = vmatprep.subr.bf16.mxu0 %v2008_v0 }
  0xcd   : > { %1602 = vmatpush3.bf16.msra.mxu0 %v1777_v39  ;;  %v1811_v39 = vld [vmem:[%s2263_s20 + $0x4] sm:$0xff]   ;;  %s1248_s20 = scalar_lea.sflag [#allocation6], %s2259_s21 }
  0xce   : > { %1603 = vmatprep.subr.bf16.mxu0 %v2008_v0 }
  0xd1   : > { %1604 = vmatpush3.bf16.msra.mxu0 %v1779_v41 }
  0xd2   : > { %1605 = vmatprep.subr.bf16.mxu0 %v2008_v0 }
  0xd5   : > { %1606 = vmatpush3.bf16.msra.mxu0 %v1781_v43 }
  0xd6   : > { %1607 = vmatprep.subr.bf16.mxu0 %v2008_v0 }
  0xd9   : > { %1608 = vmatpush3.bf16.msra.mxu0 %v1783_v45 }
  0xda   : > { %1609 = vmatprep.subr.bf16.mxu0 %v2008_v0 }
  0xdd   : > { %1610 = vmatpush3.bf16.msra.mxu0 %v1785_v48 }
  0xde   : > { %1611 = vmatprep.subr.bf16.mxu0 %v2008_v0 }
  0xe1   : > { %1612 = vmatpush3.bf16.msra.mxu0 %v1787_v50 }
  0xe2   : > { %1613 = vmatprep.subr.bf16.mxu0 %v2008_v0 }
  0xe5   : > { %1614 = vmatpush3.bf16.msra.mxu0 %v1789_v52  ;;  %v1437_v52 = vld [vmem:[%s2423_s6] ss:$0 sm:$0xff] }
  0xe6   : > { %1639 = vmatprep.subr.bf16.mxu0 %v2008_v0 }
 0x17b   : > { %v458_v53 = vpop.f32.mrb[0].mxu0  ;;  %v584_v54 = vpop.f32.mrb[0].mxu1 }
 0x17c   : > { %v1537_v55 = vpop.f32.mrb[1].mxu0  ;;  %v591_v56 = vadd.f32 %v584_v54, %v458_v53  ;;  %v1557_v57 = vpop.f32.mrb[1].mxu1 }
 0x17d   : > { %v461_v58 = vpop.f32.mrb[2].mxu0  ;;  %v587_v59 = vpop.f32.mrb[2].mxu1 }
 0x17e   : > { %v1538_v60 = vpop.f32.mrb[3].mxu0  ;;  %v592_v61 = vadd.f32 %v587_v59, %v461_v58  ;;  %v1558_v62 = vpop.f32.mrb[3].mxu1 }
 0x19b   : > { %v704_v63 = vpop.f32.mrb[4].mxu0 }
 0x19c   : > { %v711_v2 = vadd.f32 %v704_v63, %v591_v56  ;;  %v1577_v3 = vpop.f32.mrb[5].mxu0 }
 0x19d   : > { %v707_v4 = vpop.f32.mrb[6].mxu0 }
 0x19e   : > { %v724_v5 = vadd.f32 %v1404_v1, %v711_v2  ;;  %v712_v6 = vadd.f32 %v707_v4, %v592_v61  ;;  %v1578_v7 = vpop.f32.mrb[7].mxu0 }
 0x1a0   : > { %v726_v8 = vmax.f32 %v724_v5, 0.0  ;;  %v725_v9 = vadd.f32 %v1404_v1, %v712_v6 }
 0x1a2   : > { %v1453_v10 = vpack.c.bf16 %v726_v8, %v726_v8  ;;  %v727_v11 = vmax.f32 %v725_v9, 0.0 }
 0x1a4   : > { %737 = vst [vmem:[#allocation2 + $0x4] sm:$0xf] %v1453_v10  ;;  %v1454_v12 = vpack.c.bf16 %v727_v11, %v727_v11 }
 0x1a6   : > { %738 = vst [vmem:[#allocation2 + $0x8] sm:$0xf] %v1454_v12 }
 0x1ab   : > { %v1790_v13 = vld [vmem:[#allocation2] sm:$0xfc]  }
 0x1ac   : > { %v1792_v14 = vld [vmem:[#allocation2] sm:$0xf8]   ;;  %v766_v17 = vrot.slane %v1790_v13, 2 }
 0x1ad   : > { %v1791_v15 = vld [vmem:[#allocation2 + $0x8] ss:$0 sps:$4 sm:$0x33]   ;;  %v891_v20 = vrot.slane %v1792_v14, 3 }
 0x1ae   : > { %v1793_v16 = vld [vmem:[#allocation2 + $0x8] ss:$0 sps:$4 sm:$0x77]   ;;  %v767_v18 = vrot.slane %v1791_v15, 2 }
 0x1af   : > { %v892_v21 = vrot.slane %v1793_v16, 3  ;;  %v1810_v40 = vld [vmem:[#allocation2 + $0x4] sm:$0xff]  }
 0x1b0   : > { %v768_v23 = vsel %vm371_vm1, %v766_v17, %v767_v18 }
 0x1b1   : > { %1596 = vmatmul.mubr.bf16.vlgmr.msra.gmra.mrb[4].mxu1 %v768_v23  ;;  %v893_v24 = vsel %vm497_vm2, %v891_v20, %v892_v21 }
 0x1b2   : > { %1616 = vmatmul.mubr.bf16.vlgmr.msra.gmra.mrb[8].mxu0 %v893_v24  ;;  %1620 = vmatpush3.bf16.msra.mxu1 %v1794_v19 }
 0x1b3   : > { %1640 = vmatpush3.bf16.msra.mxu0 %v1795_v22  ;;  %1621 = vmatprep.subr.bf16.mxu1 %v2008_v0 }
 0x1b4   : > { %1641 = vmatprep.subr.bf16.mxu0 %v2008_v0  ;;  %1635 = vmatprep.mubr.msk.bf16.mxu1 %vm2009_vm0, %v2008_v0 }
 0x1b5   : > { %1655 = vmatprep.mubr.msk.bf16.mxu0 %vm2009_vm0, %v2008_v0 }
 0x1b6   : > { %1622 = vmatpush3.bf16.msra.mxu1 %v1796_v25 }
 0x1b7   : > { %1642 = vmatpush3.bf16.msra.mxu0 %v1797_v26  ;;  %1623 = vmatprep.subr.bf16.mxu1 %v2008_v0 }
 0x1b8   : > { %1643 = vmatprep.subr.bf16.mxu0 %v2008_v0 }
 0x1ba   : > { %1624 = vmatpush3.bf16.msra.mxu1 %v1798_v27 }
 0x1bb   : > { %1644 = vmatpush3.bf16.msra.mxu0 %v1799_v28  ;;  %1625 = vmatprep.subr.bf16.mxu1 %v2008_v0 }
 0x1bc   : > { %1645 = vmatprep.subr.bf16.mxu0 %v2008_v0 }
 0x1be   : > { %1626 = vmatpush3.bf16.msra.mxu1 %v1800_v29 }
 0x1bf   : > { %1646 = vmatpush3.bf16.msra.mxu0 %v1801_v30  ;;  %1627 = vmatprep.subr.bf16.mxu1 %v2008_v0 }
 0x1c0   : > { %1647 = vmatprep.subr.bf16.mxu0 %v2008_v0 }
 0x1c2   : > { %1628 = vmatpush3.bf16.msra.mxu1 %v1802_v31 }
 0x1c3   : > { %1648 = vmatpush3.bf16.msra.mxu0 %v1803_v32  ;;  %1629 = vmatprep.subr.bf16.mxu1 %v2008_v0 }
 0x1c4   : > { %1649 = vmatprep.subr.bf16.mxu0 %v2008_v0 }
 0x1c6   : > { %1630 = vmatpush3.bf16.msra.mxu1 %v1804_v33 }
 0x1c7   : > { %1650 = vmatpush3.bf16.msra.mxu0 %v1805_v34  ;;  %1631 = vmatprep.subr.bf16.mxu1 %v2008_v0 }
 0x1c8   : > { %1651 = vmatprep.subr.bf16.mxu0 %v2008_v0 }
 0x1ca   : > { %1632 = vmatpush3.bf16.msra.mxu1 %v1806_v35 }
 0x1cb   : > { %1652 = vmatpush3.bf16.msra.mxu0 %v1807_v36  ;;  %1633 = vmatprep.subr.bf16.mxu1 %v2008_v0 }
 0x1cc   : > { %1653 = vmatprep.subr.bf16.mxu0 %v2008_v0  ;;  %v1436_v0 = vld [vmem:[%s2421_s4] ss:$0 sm:$0xff] }
 0x1ce   : > { %1634 = vmatpush3.bf16.msra.mxu1 %v1808_v37 }
 0x1cf   : > { %1654 = vmatpush3.bf16.msra.mxu0 %v1809_v38 }
 0x1d1   : > { %1636 = vmatmul.mubr.bf16.vlgmr.msra.gmra.mrb[8].mxu1 %v1810_v40 }
 0x1d2   : > { %1656 = vmatmul.mubr.bf16.vlgmr.msra.gmra.mrb[12].mxu0 %v1811_v39 }
 0x284   : > { %v852_v41 = vpop.f32.mrb[4].mxu1 }
 0x285   : > { %v977_v42 = vpop.f32.mrb[8].mxu0  ;;  %v1597_v43 = vpop.f32.mrb[5].mxu1 }
 0x286   : > { %v984_v44 = vadd.f32 %v977_v42, %v852_v41  ;;  %v1617_v45 = vpop.f32.mrb[9].mxu0  ;;  %v855_v46 = vpop.f32.mrb[6].mxu1 }
 0x287   : > { %v980_v47 = vpop.f32.mrb[10].mxu0  ;;  %v1598_v48 = vpop.f32.mrb[7].mxu1 }
 0x288   : > { %v985_v49 = vadd.f32 %v980_v47, %v855_v46  ;;  %v1618_v50 = vpop.f32.mrb[11].mxu0 }
 0x2a4   : > { %v1097_v51 = vpop.f32.mrb[8].mxu1 }
 0x2a5   : > { %v1104_v53 = vadd.f32 %v1097_v51, %v984_v44  ;;  %v1637_v54 = vpop.f32.mrb[9].mxu1  ;;  %v1234_v55 = vpop.f32.mrb[12].mxu0 }
 0x2a6   : > { %v1100_v56 = vpop.f32.mrb[10].mxu1  ;;  %v1657_v57 = vpop.f32.mrb[13].mxu0  ;;  %v1235_v59 = vadd.f32 %v1437_v52, %v1234_v55 }
 0x2a7   : > { %v1117_v58 = vadd.f32 %v1436_v0, %v1104_v53  ;;  %v1105_v60 = vadd.f32 %v1100_v56, %v985_v49  ;;  %v1638_v61 = vpop.f32.mrb[11].mxu1  ;;  %v1237_v62 = vpop.f32.mrb[14].mxu0 }
 0x2a8   : > { %v1658_v63 = vpop.f32.mrb[15].mxu0  ;;  %v1238_v5 = vadd.f32 %v1437_v52, %v1237_v62 }
 0x2a9   : > { %v1119_v1 = vmax.f32 %v1117_v58, 0.0  ;;  %v1118_v2 = vadd.f32 %v1436_v0, %v1105_v60 }
 0x2ab   : > { %v1241_v3 = vadd.f32 %v1235_v59, %v1119_v1  ;;  %v1120_v4 = vmax.f32 %v1118_v2, 0.0 }
 0x2ad   : > { %v1243_v6 = vmax.f32 %v1241_v3, 0.0  ;;  %v1242_v7 = vadd.f32 %v1238_v5, %v1120_v4 }
 0x2af   : > { %1245 = vst [vmem:[%s340_s14] sm:$0xff] %v1243_v6  ;;  %v1244_v8 = vmax.f32 %v1242_v7, 0.0 }
 0x2b1   : > { %1246 = vst [vmem:[%s340_s14 + $0x8] sm:$0xff] %v1244_v8 }
 0x2b2   : > { %1939 = shalt.err (!%p1936_p4)
}
 0x2b3   : > { %s1940_s11 = scalar_lea.hbm %s2373_s10, 256  ;;  %s1944_s16 = scalar_lea.hbm %s2424_s7, 512 }
 0x2b4   : > { %p1941_p9 = scmp.ne.s32.totalorder %s2373_s10, %s1940_s11  ;;  %p1945_p8 = scmp.lt.u32.totalorder %s2373_s10, %s2424_s7 }
 0x2b5   : > { %p1946_p13 = scmp.lt.u32.totalorder %s1944_s16, %s1940_s11  ;;  %p1948_p10 = scmp.lt.u32.totalorder %s1940_s11, %s2373_s10 }
 0x2b6   : > { %p1942_p0 = pnand %p1941_p9, %p2208_p5 }
 0x2b7   : > { %p1947_p6 = por %p1946_p13, %p1945_p8 }
 0x2b8   : > { %p1943_p11 = pneg %p1942_p0 }
 0x2b9   : > { %p1949_p3 = por %p1948_p10, %p1947_p6 }
 0x2bb   : > { %p1950_p7 = pnand %p1949_p3, %p1943_p11 }
 0x2bd   : > { %1953 = shalt.err (!%p1950_p7)
}
 0x2be   : > { %s2012_s17 = smov 128   ;;  %s2013_s29 = smov 8  }
 0x2bf   : > { %1675 = dma.vmem_to_hbm [thread:$0]  (%p2208_p5), %s2368_s13, 256, %s2373_s10, %s1248_s20, %s2012_s17, %s2012_s17, %s2013_s29  }
 0x2c0 PF: > { %s2448_s30 = sld [smem:[#allocation17_spill]]  ;;  %s1276_s28 = sand.u32 1, %s1988_s24  }
 0x2c1   : > { %p2450_p1 = scmp.ge.s32.totalorder %s2000_s27, 2  ;;  %s1277_s9 = scalar_lea.sflag [#allocation6], %s1276_s28 }
 0x2c6   : > { %p2449_p12 = scmp.ne.s32.totalorder %s2448_s30, 0 }
 0x2c8   : > { %p1692_p2 = pnand %p2450_p1, %p2449_p12 }
 0x2ca   : > { %1983 = dma.done.wait (!%p1692_p2), %s1277_s9, 256  }
 0x2cb   : > { %1985 = vsyncadd (!%p1692_p2), %s1277_s9, 4294967040  ;;  %p22_p4 = scmp.ge.s32.totalorder %s2194_s22, 4   ;;  %s2451_s24 = smov %s1992_s25 }
 0x2cc   : > { %s2452_s25 = smov %s1996_s26  ;;  %s2453_s26 = smov %s2204_s18 }
 0x2cd   : > { %s2454_s27 = smov %s2194_s22  ;;  %24 = sbr.rel (!%p22_p4) target bundleno = 7 (0x7), region = 109 }
 0x2d4   :  { %1282 = vsyncpa [#allocation5], 1 }
 0x2d5   :  { %1284 = vsyncpa [#allocation5 + $0x1], 1 }
 0x2d6   :  { %1285 = vsyncpa [#allocation8], 1 }
 0x2d7   :  { %1286 = vsyncpa [#allocation11], 1 }
 0x2d8   :  { %1287 = vsyncpa [#allocation6], 1 }
 0x2d9   :  { %1289 = vsyncpa [#allocation6 + $0x1], 1 }

</bundles_post_ra>
